<compile_context>
chip_gen: v5e
topology: v5e:2x2
jax: 0.10.0
libtpu: 0.0.40
codegen_flags: <defaults>
</compile_context>

<pallas_src>
import math

import numpy as np
import jax
import jax.numpy as jnp
from jax.experimental import pallas as pl
from jax.experimental.pallas import tpu as pltpu


LANE = 128


def _round_up(x, m):
    return ((x + m - 1) // m) * m


def _sublane_multiple(dtype):
    # 8 rows for 4-byte dtypes, 16 for 2-byte, 32 for 1-byte (sublane packing).
    return max(8, 32 // jnp.dtype(dtype).itemsize)


def _physical_vmem_bytes():
    try:
        info = pltpu.get_tpu_info()
        vmem = getattr(info, "vmem_capacity_bytes", None)
        if vmem:
            return int(vmem)
    except Exception:
        pass
    return 64 * 1024 * 1024   # v7x per-TC size: safe lower bound for all gens


# ----------------------------- Pallas kernel ------------------------------ #

def _dct_pool_kernel(x_ref, w_ref, o_ref):
    # x_ref : (TN, C, HW)  batch tile of the input
    # w_ref : (C, HW)      DCT filter, resident in VMEM (constant index_map)
    # o_ref : (TN, C)      per-(batch, channel) spectral coefficient
    x = x_ref[...].astype(jnp.float32)
    w = w_ref[...].astype(jnp.float32)
    # f32 accumulation of the HW reduction (matches PyTorch f32 semantics).
    o_ref[...] = jnp.sum(x * w[None, :, :], axis=-1).astype(o_ref.dtype)


def _choose_tn(N, sub, max_rows):
    """Pick the batch-tile size.

    Preference:
      1. the largest multiple-of-`sub` divisor of N that fits `max_rows` and
         yields >= 2 grid steps (pipeline overlap + v7x megacore sharding),
      2. the whole batch as a single full-extent block if it fits,
      3. the largest multiple of `sub` that fits (cdiv grid; Pallas masks the
         ragged last block, so no host-side padding is needed).
    """
    max_rows = max(1, max_rows)
    hi = min(N // 2, max_rows)
    divisors = [d for d in range(sub, hi + 1, sub) if N % d == 0]
    if divisors:
        return max(divisors)
    if N <= max_rows:
        return N
    return max(sub, (max_rows // sub) * sub)


def multi_spectral_dct(x, weight, *, tn=None, force_pallas=False,
                       xla_fallback_bytes=1 << 20):
    """Forward of MultiSpectralDCTLayer: sum(x * weight, dims=(2, 3)) -> (N, C)."""
    N, C, H, W = x.shape
    assert weight.shape == (C, H, W), "weight must be (C, H, W) matching x"
    HW = H * W

    # Tiny problems: pallas_call launch + pipeline overhead dwarfs the HBM read.
    if not force_pallas and x.size * x.dtype.itemsize < xla_fallback_bytes:
        y = jnp.sum(x.astype(jnp.float32) * weight.astype(jnp.float32)[None],
                    axis=(2, 3))
        return y.astype(x.dtype)

    x2 = x.reshape(N, C, HW)          # contiguous reshape, no HBM transpose
    w2 = weight.reshape(C, HW)
    # TODO(synk): if the caller already has NHWC data and HW % 128 != 0 but
    # C % 128 == 0 (standard 7x7 FcaNet heads), an (N, HW, C) layout avoids the
    # HW->128 lane padding; not done here since the module is NCHW and the
    # transpose would cost an extra full HBM pass.

    sub_x = _sublane_multiple(x2.dtype)       # sublane granularity of x tile (C axis)
    sub_w = _sublane_multiple(w2.dtype)
    sub_out = _sublane_multiple(x.dtype)      # output-rows (batch axis) granularity

    # ---- VMEM accounting with layout padding (C -> sublane mult, HW -> 128) ----
    hw_pad = _round_up(HW, LANE)
    x_row_bytes = _round_up(C, sub_x) * hw_pad * x2.dtype.itemsize    # per batch row
    tmp_row_bytes = _round_up(C, 8) * hw_pad * 4                      # f32 product temp
    out_row_bytes = _round_up(C, LANE) * x.dtype.itemsize             # per batch row
    w_bytes = 2 * _round_up(C, sub_w) * hw_pad * w2.dtype.itemsize    # double-buffered filter

    phys_vmem = _physical_vmem_bytes()
    budget = min(int(phys_vmem * 0.6), 48 * 1024 * 1024)     # working-set target
    vmem_limit = min(int(phys_vmem * 0.8), 64 * 1024 * 1024)  # explicit scoped limit

    per_row = 2 * x_row_bytes + tmp_row_bytes + 2 * out_row_bytes
    max_rows = max(1, (budget - w_bytes) // per_row)
    # TODO(synk): if even a sub_out-row tile exceeds the budget (huge C*HW),
    # C and/or HW would need tiling with an accumulator; not needed for FcaNet sizes.

    if tn is None:
        tn = _choose_tn(N, sub_out, max_rows)
    tn = min(tn, N)

    grid = (pl.cdiv(N, tn),)

    out = pl.pallas_call(
        _dct_pool_kernel,
        out_shape=jax.ShapeDtypeStruct((N, C), x.dtype),
        grid_spec=pltpu.PrefetchScalarGridSpec(
            num_scalar_prefetch=0,
            grid=grid,
            in_specs=[
                pl.BlockSpec((tn, C, HW), lambda n: (n, 0, 0)),   # batch tile
                pl.BlockSpec((C, HW), lambda n: (0, 0)),          # resident filter
            ],
            out_specs=pl.BlockSpec((tn, C), lambda n: (n, 0)),
        ),
        compiler_params=pltpu.CompilerParams(
            dimension_semantics=("parallel",),   # disjoint batch tiles -> megacore
            vmem_limit_bytes=vmem_limit,
        ),
    )(x2, w2)

    return out


# ------------------- DCT filter construction (init-time) ------------------- #
# Mirrors MultiSpectralDCTLayer.get_dct_filter exactly; constant buffer built
# once at module init (host-side numpy), not part of the forward.

def _build_filter(pos, freq, POS):
    result = math.cos(math.pi * freq * (pos + 0.5) / POS) / math.sqrt(POS)
    if freq == 0:
        return result
    return result * math.sqrt(2)


def get_dct_filter(tile_size_x, tile_size_y, mapper_x, mapper_y, channel):
    assert len(mapper_x) == len(mapper_y)
    assert channel % len(mapper_x) == 0, "channel must be divisible by num_freq"
    dct_filter = np.zeros((channel, tile_size_x, tile_size_y), dtype=np.float32)
    c_part = channel // len(mapper_x)
    for i, (u_x, v_y) in enumerate(zip(mapper_x, mapper_y)):
        for t_x in range(tile_size_x):
            for t_y in range(tile_size_y):
                value = (_build_filter(t_x, u_x, tile_size_x)
                         * _build_filter(t_y, v_y, tile_size_y))
                dct_filter[i * c_part:(i + 1) * c_part, t_x, t_y] = value
    return jnp.asarray(dct_filter)


# --------------------------------- demo ----------------------------------- #

if __name__ == "__main__":
    mapper_x = [0, 1, 2, 3]
    mapper_y = [0, 1, 2, 3]
    key = jax.random.PRNGKey(0)
    k1, k2 = jax.random.split(key)

    # ---- test 1: MultiSpectralDCTLayer(16, 16, mappers, channel=32), f32 ----
    N, C, H, W = 2, 32, 16, 16
    weight = get_dct_filter(H, W, mapper_x, mapper_y, C)            # (C, H, W)
    x = jax.random.normal(k1, (N, C, H, W), jnp.float32)

    y = jax.block_until_ready(multi_spectral_dct(x, weight, force_pallas=True))
    y_ref = jnp.sum(x * weight[None], axis=(2, 3))
    assert y.shape == (N, C)
    assert jnp.allclose(y, y_ref, atol=1e-5, rtol=1e-5), "f32 mismatch vs reference"

    # ---- test 2: larger bf16 problem, exercises the multi-tile grid path ----
    N2, C2 = 48, 64
    weight2 = get_dct_filter(H, W, mapper_x, mapper_y, C2).astype(jnp.bfloat16)
    x2 = jax.random.normal(k2, (N2, C2, H, W), jnp.bfloat16)

    y2 = jax.block_until_ready(multi_spectral_dct(x2, weight2))
    y2_ref = jnp.sum(x2.astype(jnp.float32) * weight2.astype(jnp.float32)[None],
                     axis=(2, 3))
    assert y2.shape == (N2, C2)
    assert jnp.allclose(y2.astype(jnp.float32), y2_ref, atol=5e-2, rtol=2e-2), \
        "bf16 mismatch vs reference"

    print("KERNEL_OK")
</pallas_src>

<mosaic_0001>
module attributes {stable_mosaic.version = 11 : i64} {
  func.func @_dct_pool_kernel(%arg0: i32, %arg1: memref<2x32x256xf32, #tpu.memory_space<vmem>>, %arg2: memref<32x256xf32, #tpu.memory_space<vmem>>, %arg3: memref<2x32xf32, #tpu.memory_space<vmem>>) attributes {dimension_semantics = [#tpu.dimension_semantics<parallel>], iteration_bounds = array<i64: 1>, scalar_prefetch = 0 : i64, scratch_operands = 0 : i64, tpu.core_type = #tpu.core_type<tc>, window_params = [{transform_indices = @transform_0, window_bounds = array<i64: 2, 32, 256>}, {pipeline_mode = #tpu.pipeline_mode<synchronous>, transform_indices = @transform_1, window_bounds = array<i64: 32, 256>}, {transform_indices = @transform_2, window_bounds = array<i64: 2, 32>}]} {
    %c0 = arith.constant 0 : index
    %c0_0 = arith.constant 0 : index
    %c0_1 = arith.constant 0 : index
    %0 = vector.load %arg1[%c0, %c0_0, %c0_1] : memref<2x32x256xf32, #tpu.memory_space<vmem>>, vector<2x32x256xf32>
    %c0_2 = arith.constant 0 : index
    %c0_3 = arith.constant 0 : index
    %1 = vector.load %arg2[%c0_2, %c0_3] : memref<32x256xf32, #tpu.memory_space<vmem>>, vector<32x256xf32>
    %2 = vector.shape_cast %1 : vector<32x256xf32> to vector<1x32x256xf32>
    %3 = vector.broadcast %2 : vector<1x32x256xf32> to vector<2x32x256xf32>
    %4 = arith.mulf %0, %3 : vector<2x32x256xf32>
    %cst = arith.constant dense<0.000000e+00> : vector<2x32xf32>
    %5 = vector.multi_reduction <add>, %4, %cst [2] : vector<2x32x256xf32> to vector<2x32xf32>
    %c0_4 = arith.constant 0 : index
    %c0_5 = arith.constant 0 : index
    %6 = vector.load %arg3[%c0_4, %c0_5] : memref<2x32xf32, #tpu.memory_space<vmem>>, vector<2x32xf32>
    tpu.vector_store %arg3[%c0_4, %c0_5], %5 {strides = array<i32>} : memref<2x32xf32, #tpu.memory_space<vmem>>, vector<2x32xf32>,
    return
  }
  func.func @transform_0(%arg0: i32) -> (i32, i32, i32) {
    %c0_i32 = arith.constant 0 : i32
    %c0_i32_0 = arith.constant 0 : i32
    %c0_i32_1 = arith.constant 0 : i32
    return %arg0, %c0_i32, %c0_i32_0 : i32, i32, i32
  }
  func.func @transform_1(%arg0: i32) -> (i32, i32) {
    %c0_i32 = arith.constant 0 : i32
    %c0_i32_0 = arith.constant 0 : i32
    %c0_i32_1 = arith.constant 0 : i32
    return %c0_i32, %c0_i32_0 : i32, i32
  }
  func.func @transform_2(%arg0: i32) -> (i32, i32) {
    %c0_i32 = arith.constant 0 : i32
    %c0_i32_0 = arith.constant 0 : i32
    return %arg0, %c0_i32 : i32, i32
  }
}

</mosaic_0001>

<bundles_post_ra>
// kernel: tpu_custom_call.1
= control target key start
LH: loop header
LB: loop body
LE: loop exit
PB: predicated region body
PF: predicated region fallthrough
CT: control target
= control target key end

     0   :  { %7 = vsyncpa [#allocation3], 0  ;;  %s273_s0 = inlined_call_operand.hbm [shape: f32[2,32,256], index: 0, kind: input, shape index: {}]   ;;  %s274_s1 = inlined_call_operand.hbm [shape: f32[32,256], index: 1, kind: input, shape index: {}]   ;;  %s275_s2 = inlined_call_operand.hbm [shape: f32[2,32], index: 2, kind: output, shape index: {}]  }
   0x1   :  { %8 = vsyncpa [#allocation6], 0 }
   0x2   :  { %9 = vsyncpa [#allocation4], 0  ;;  %s14_s11 = sshll.u32 %s273_s0, 4  ;;  %s244_s12 = smov [#allocation2]   ;;  %s15_s11 = int_to_ptr.hbm [resolvable:$true] %s14_s11 }
   0x3   :  { %s16_s13 = sshll.u32 %s244_s12, 4  ;;  %s27_s16 = sshll.u32 %s274_s1, 4  ;;  %s17_s13 = int_to_ptr.vmem [resolvable:$true] %s16_s13  ;;  %s28_s16 = int_to_ptr.hbm [resolvable:$true] %s27_s16 }
   0x4   :  { %s245_s17 = smov 256   ;;  %s246_s18 = smov 16  }
   0x5   :  { %22 = dma.hbm_to_vmem [thread:$0]  %s15_s11, 2048, %s17_s13, [#allocation3], %s245_s17, %s245_s17, %s246_s18  }
   0x6   :  { %s247_s19 = smov [#allocation5]  }
   0x7   :  { %s29_s20 = sshll.u32 %s247_s19, 4  ;;  %s30_s20 = int_to_ptr.vmem [resolvable:$true] %s29_s20 }
   0x8   :  { %35 = dma.hbm_to_vmem [thread:$0]  %s28_s16, 1024, %s30_s20, [#allocation6], %s245_s17, %s245_s17, %s246_s18  }
   0x9   :  { %238 = dma.done.wait [#allocation3], 2048  }
   0xa   :  { %239 = vsyncadd [#allocation3], 4294965248 }
   0xb   :  { %240 = dma.done.wait [#allocation6], 1024  }
   0xc   :  { %241 = vsyncadd [#allocation6], 4294966272  ;;  %v52_v0 = vld [vmem:[#allocation2 + $0x40] sm:$0xff]  ;;  %v53_v1 = vld [vmem:[#allocation2 + $0x48] sm:$0xff]  ;;  %v116_v50 = vlaneseq  ;;  %vm121_vm0 = vcmask 130112   ;;  %vm125_vm1 = vcmask 195712  }
   0xd   :  { %v60_v2 = vld [vmem:[#allocation5] sm:$0xff]  ;;  %v61_v3 = vld [vmem:[#allocation5 + $0x8] sm:$0xff]  ;;  %v54_v15 = vld [vmem:[#allocation2 + $0x50] sm:$0xff]  ;;  %vm129_vm2 = vcmask 261312   ;;  %s248_s0 = smov [#allocation7]   ;;  %s150_s23 = sshll.u32 %s275_s2, 4  ;;  %s151_s23 = int_to_ptr.hbm [resolvable:$true] %s150_s23 }
   0xe   :  { %v76_v4 = vmul.f32 %v60_v2, %v52_v0  ;;  %v44_v5 = vld [vmem:[#allocation2] sm:$0xff]  ;;  %v45_v6 = vld [vmem:[#allocation2 + $0x8] sm:$0xff]  ;;  %v77_v7 = vmul.f32 %v61_v3, %v53_v1  ;;  %v55_v16 = vld [vmem:[#allocation2 + $0x58] sm:$0xff]  ;;  %v117_v52 = vand.u32 127, %v116_v50  ;;  %s148_s1 = sshll.u32 %s248_s0, 4  ;;  %vm138_vm3 = vcmask 1041409   ;;  %s149_s1 = int_to_ptr.vmem [resolvable:$true] %s148_s1 }
   0xf   :  { %v68_v8 = vmul.f32 %v60_v2, %v44_v5  ;;  %v69_v9 = vmul.f32 %v61_v3, %v45_v6  ;;  %v48_v10 = vld [vmem:[#allocation2 + $0x20] sm:$0xff]  ;;  %v49_v11 = vld [vmem:[#allocation2 + $0x28] sm:$0xff]  ;;  %v62_v20 = vld [vmem:[#allocation5 + $0x10] sm:$0xff]  ;;  %vm141_vm4 = vcmask 254976  }
  0x10   :  { %v64_v12 = vld [vmem:[#allocation5 + $0x20] sm:$0xff]  ;;  %v65_v13 = vld [vmem:[#allocation5 + $0x28] sm:$0xff]  ;;  %v96_v17 = vadd.f32 %v77_v7, %v76_v4  ;;  %v63_v21 = vld [vmem:[#allocation5 + $0x18] sm:$0xff]  ;;  %v78_v23 = vmul.f32 %v62_v20, %v54_v15  ;;  %v119_v53 = vadd.s32 4294967288, %v117_v52  ;;  %v123_v59 = vadd.s32 4294967280, %v117_v52 }
  0x11   :  { %v72_v14 = vmul.f32 %v64_v12, %v48_v10  ;;  %v84_v18 = vadd.f32 %v69_v9, %v68_v8  ;;  %v73_v19 = vmul.f32 %v65_v13, %v49_v11  ;;  %v46_v22 = vld [vmem:[#allocation2 + $0x10] sm:$0xff]  ;;  %v79_v24 = vmul.f32 %v63_v21, %v55_v16  ;;  %v47_v25 = vld [vmem:[#allocation2 + $0x18] sm:$0xff]  ;;  %v56_v26 = vld [vmem:[#allocation2 + $0x60] sm:$0xff] }
  0x12   :  { %v57_v27 = vld [vmem:[#allocation2 + $0x68] sm:$0xff]  ;;  %97 = vadd.xlane.f32.xlu1 %v96_v17  ;;  %v70_v29 = vmul.f32 %v62_v20, %v46_v22  ;;  %v71_v30 = vmul.f32 %v63_v21, %v47_v25  ;;  %v80_v31 = vmul.f32 %v64_v12, %v56_v26  ;;  %v58_v35 = vld [vmem:[#allocation2 + $0x70] sm:$0xff]  ;;  %v59_v36 = vld [vmem:[#allocation2 + $0x78] sm:$0xff]  ;;  %v127_v62 = vadd.s32 4294967272, %v117_v52 }
  0x13   :  { %85 = vadd.xlane.f32.xlu0 %v84_v18  ;;  %v90_v28 = vadd.f32 %v73_v19, %v72_v14  ;;  %v81_v32 = vmul.f32 %v65_v13, %v57_v27  ;;  %v99_v33 = vadd.f32 %v79_v24, %v78_v23  ;;  %v66_v37 = vld [vmem:[#allocation5 + $0x30] sm:$0xff]  ;;  %v67_v38 = vld [vmem:[#allocation5 + $0x38] sm:$0xff] }
  0x14   :  { %v87_v34 = vadd.f32 %v71_v30, %v70_v29  ;;  %v50_v39 = vld [vmem:[#allocation2 + $0x30] sm:$0xff]  ;;  %v51_v40 = vld [vmem:[#allocation2 + $0x38] sm:$0xff]  ;;  %v82_v42 = vmul.f32 %v66_v37, %v58_v35  ;;  %v83_v43 = vmul.f32 %v67_v38, %v59_v36 }
  0x15   :  { %91 = vadd.xlane.f32.xlu2 %v90_v28  ;;  %v102_v41 = vadd.f32 %v81_v32, %v80_v31  ;;  %v74_v44 = vmul.f32 %v66_v37, %v50_v39  ;;  %v75_v45 = vmul.f32 %v67_v38, %v51_v40 }
  0x16   :  { %v105_v46 = vadd.f32 %v83_v43, %v82_v42 }
  0x17   :  { %v93_v47 = vadd.f32 %v75_v45, %v74_v44 }
  0x1a   :  { %100 = vadd.xlane.f32.xlu1 %v99_v33 }
  0x1b   :  { %88 = vadd.xlane.f32.xlu0 %v87_v34 }
  0x1d   :  { %103 = vadd.xlane.f32.xlu2 %v102_v41 }
  0x22   :  { %106 = vadd.xlane.f32.xlu1 %v105_v46 }
  0x23   :  { %94 = vadd.xlane.f32.xlu0 %v93_v47 }
  0x85   :  { %v98_v48 = vpop.xlane.xlu1 %97 }
  0x86   :  { %v86_v49 = vpop.xlane.xlu0 %85  ;;  %v131_v60 = vperm.slane %v98_v48, %v117_v52 }
  0x87   :  { %v118_v61 = vperm.slane %v86_v49, %v117_v52 }
  0x88   :  { %v92_v51 = vpop.xlane.xlu2 %91 }
  0x89   :  { %v124_v2 = vperm.slane %v92_v51, %v123_v59 }
  0x8d   :  { %v101_v54 = vpop.xlane.xlu1 %100 }
  0x8e   :  { %v89_v55 = vpop.xlane.xlu0 %88  ;;  %v132_v56 = vperm.slane %v101_v54, %v119_v53 }
  0x8f   :  { %v120_v57 = vperm.slane %v89_v55, %v119_v53 }
  0x90   :  { %v104_v58 = vpop.xlane.xlu2 %103  ;;  %v133_v0 = vsel %vm121_vm0, %v132_v56, %v131_v60 }
  0x91   :  { %v134_v63 = vperm.slane %v104_v58, %v123_v59  ;;  %v122_v1 = vsel %vm121_vm0, %v120_v57, %v118_v61 }
  0x92   :  { %v126_v8 = vsel %vm125_vm1, %v124_v2, %v122_v1 }
  0x93   :  { %v135_v7 = vsel %vm125_vm1, %v134_v63, %v133_v0 }
  0x95   :  { %v107_v3 = vpop.xlane.xlu1 %106 }
  0x96   :  { %v95_v4 = vpop.xlane.xlu0 %94  ;;  %v136_v5 = vperm.slane %v107_v3, %v127_v62 }
  0x97   :  { %v128_v6 = vperm.slane %v95_v4, %v127_v62 }
  0x98   :  { %v137_v9 = vsel %vm129_vm2, %v136_v5, %v135_v7 }
  0x99   :  { %v130_v10 = vsel %vm129_vm2, %v128_v6, %v126_v8 }
  0x9a   :  { %v139_v11 = vsel %vm138_vm3, %v137_v9, %v130_v10 }
  0x9b   :  { %142 = vst.msk [vmem:[#allocation7] sm:$0x3] %vm141_vm4, %v139_v11 }
  0x9c   :  { %153 = dma.vmem_to_hbm [thread:$0]  %s149_s1, 32, %s151_s23, [#allocation4]  }
  0x9d   :  { %242 = dma.done.wait [#allocation4], 32  }
  0x9e   :  { %243 = vsyncadd [#allocation4], 4294967264 }
  0x9f   :  { %158 = vsyncpa [#allocation3], 1 }
  0xa0   :  { %159 = vsyncpa [#allocation6], 1 }
  0xa1   :  { %160 = vsyncpa [#allocation4], 1 }

</bundles_post_ra>
